<compile_context>
chip_gen: v5e
topology: v5e:2x2
jax: 0.10.0
libtpu: 0.0.40
codegen_flags: <defaults>
</compile_context>

<pallas_src>
import jax
import jax.numpy as jnp
from jax.experimental import pallas as pl
from jax.experimental.pallas import tpu as pltpu


def _round_up(x, m):
    return (x + m - 1) // m * m


def mlpdw_kernel(x_ref,
                 w1_ref, b1_ref,
                 w2_ref, b2_ref,
                 w3_ref, b3_ref,
                 wh_ref, bh_ref,
                 wo_ref, bo_ref,
                 o_ref):
    bf16 = jnp.bfloat16
    # ---- frozen base MLP: 128(pad of 110) -> 128 -> 256 -> latent_dim ----
    h = jnp.dot(x_ref[...], w1_ref[...], preferred_element_type=jnp.float32)
    h = jnp.maximum(h + b1_ref[...], 0.0)
    h = jnp.dot(h.astype(bf16), w2_ref[...], preferred_element_type=jnp.float32)
    h = jnp.maximum(h + b2_ref[...], 0.0)
    z = jnp.dot(h.astype(bf16), w3_ref[...],
                preferred_element_type=jnp.float32) + b3_ref[...]
    # ---- downstream head: relu -> hidden(latent,256) -> relu -> out(256,2pad128) ----
    z = jnp.maximum(z, 0.0)
    h2 = jnp.dot(z.astype(bf16), wh_ref[...], preferred_element_type=jnp.float32)
    h2 = jnp.maximum(h2 + bh_ref[...], 0.0)
    o_ref[...] = (jnp.dot(h2.astype(bf16), wo_ref[...],
                          preferred_element_type=jnp.float32) + bo_ref[...])


def prepare_params(params, in_pad=128, out_pad=128):
    """Pad w1 rows 110->128 and wo/bo cols 2->128; cast weights to bf16."""
    (w1, b1, w2, b2, w3, b3, wh, bh, wo, bo) = params
    w1p = jnp.zeros((in_pad, w1.shape[1]), jnp.float32).at[:w1.shape[0], :].set(w1)
    wop = jnp.zeros((wo.shape[0], out_pad), jnp.float32).at[:, :wo.shape[1]].set(wo)
    bop = jnp.zeros((1, out_pad), jnp.float32).at[:, :bo.shape[1]].set(bo)
    bf = lambda w: w.astype(jnp.bfloat16)
    # weights in bf16 (MXU-native), biases stay f32 for exact add/ReLU
    return (bf(w1p), b1, bf(w2), b2, bf(w3), b3, bf(wh), bh, bf(wop), bop)


def mlpdw_forward(x, padded_params, out_dim, *, block_rows=512):
    """x: [B, input_dim] float32 -> [B, out_dim] float32."""
    ws = padded_params
    B, in_dim = x.shape
    in_pad = ws[0].shape[0]     # padded input features (128)
    out_pad = ws[8].shape[1]    # padded output features (128)

    # --- pad x to lane-aligned K and row-tileable M, cast to bf16 ---
    xin = x.astype(jnp.bfloat16)
    if in_dim < in_pad:
        xin = jnp.pad(xin, ((0, 0), (0, in_pad - in_dim)))
    tb = block_rows if B >= block_rows else _round_up(B, 8)
    Bp = _round_up(B, tb)
    if Bp != B:
        xin = jnp.pad(xin, ((0, Bp - B), (0, 0)))
    grid = (Bp // tb,)

    # --- specs: x/out tiled over batch, weights resident (constant index map) ---
    x_spec = pl.BlockSpec((tb, in_pad), lambda i: (i, 0))
    out_spec = pl.BlockSpec((tb, out_pad), lambda i: (i, 0))

    def const_spec(arr):
        return pl.BlockSpec(arr.shape, lambda i: (0, 0))

    weight_mats = ws[0::2]
    flops = 2 * Bp * sum(int(w.shape[0]) * int(w.shape[1]) for w in weight_mats)
    bytes_accessed = (int(xin.size) * xin.dtype.itemsize
                      + Bp * out_pad * 4
                      + sum(int(w.size) * w.dtype.itemsize for w in ws))

    out = pl.pallas_call(
        mlpdw_kernel,
        out_shape=jax.ShapeDtypeStruct((Bp, out_pad), jnp.float32),
        grid_spec=pltpu.PrefetchScalarGridSpec(
            num_scalar_prefetch=0,
            grid=grid,
            in_specs=[x_spec] + [const_spec(w) for w in ws],
            out_specs=out_spec,
        ),
        compiler_params=pltpu.CompilerParams(
            dimension_semantics=("parallel",),
            vmem_limit_bytes=32 * 1024 * 1024,
        ),
        cost_estimate=pl.CostEstimate(
            flops=flops, transcendentals=0, bytes_accessed=bytes_accessed),
    )(xin, *ws)

    return out[:B, :out_dim]


def init_params(key, input_dim=110, layer1=128, layer2=256,
                latent_dim=32, hidden=256, output_dim=2):
    """Deterministic synthetic weights; stored as [in, out], biases as [1, out]."""
    def linear(k, fan_in, fan_out):
        kw, kb = jax.random.split(k)
        scale = 1.0 / jnp.sqrt(jnp.float32(fan_in))
        w = jax.random.uniform(kw, (fan_in, fan_out), jnp.float32, -scale, scale)
        b = jax.random.uniform(kb, (1, fan_out), jnp.float32, -scale, scale)
        return w, b

    keys = jax.random.split(key, 5)
    w1, b1 = linear(keys[0], input_dim, layer1)      # base layer 1
    w2, b2 = linear(keys[1], layer1, layer2)         # base layer 2
    w3, b3 = linear(keys[2], layer2, latent_dim)     # base output -> latent
    wh, bh = linear(keys[3], latent_dim, hidden)     # self.hidden
    wo, bo = linear(keys[4], hidden, output_dim)     # self.out
    return (w1, b1, w2, b2, w3, b3, wh, bh, wo, bo)


def reference_forward(x, params):
    """Pure-JAX reference with the same bf16-matmul / f32-accumulate recipe."""
    (w1, b1, w2, b2, w3, b3, wh, bh, wo, bo) = params
    bf = jnp.bfloat16

    def mm(a, w):
        return jnp.dot(a.astype(bf), w.astype(bf),
                       preferred_element_type=jnp.float32)

    h = jnp.maximum(mm(x, w1) + b1, 0.0)
    h = jnp.maximum(mm(h, w2) + b2, 0.0)
    z = jnp.maximum(mm(h, w3) + b3, 0.0)
    h2 = jnp.maximum(mm(z, wh) + bh, 0.0)
    return mm(h2, wo) + bo


if __name__ == "__main__":
    key = jax.random.PRNGKey(0)
    k_x, k_p = jax.random.split(key)

    B, INPUT_DIM, LATENT_DIM, OUTPUT_DIM = 8, 110, 32, 2
    params = init_params(k_p, input_dim=INPUT_DIM,
                         latent_dim=LATENT_DIM, output_dim=OUTPUT_DIM)
    pparams = prepare_params(params)

    # small batch (single tile of 8 rows)
    x = jax.random.normal(k_x, (B, INPUT_DIM), jnp.float32)
    out = jax.block_until_ready(mlpdw_forward(x, pparams, OUTPUT_DIM))
    ref = reference_forward(x, params)
    assert out.shape == (B, OUTPUT_DIM)
    assert jnp.allclose(out, ref, atol=2e-2, rtol=2e-2), "mismatch vs reference (B=8)"

    # exercises multi-step batch grid + row padding (B not a multiple of the tile)
    B2 = 200
    x2 = jax.random.normal(jax.random.PRNGKey(1), (B2, INPUT_DIM), jnp.float32)
    out2 = jax.block_until_ready(mlpdw_forward(x2, pparams, OUTPUT_DIM, block_rows=64))
    ref2 = reference_forward(x2, params)
    assert out2.shape == (B2, OUTPUT_DIM)
    assert jnp.allclose(out2, ref2, atol=2e-2, rtol=2e-2), "mismatch vs reference (B=200)"

    print("KERNEL_OK")
</pallas_src>

<mosaic_0001>
module attributes {stable_mosaic.version = 11 : i64} {
  func.func @mlpdw_kernel(%arg0: i32, %arg1: memref<8x128xbf16, #tpu.memory_space<vmem>>, %arg2: memref<128x128xbf16, #tpu.memory_space<vmem>>, %arg3: memref<1x128xf32, #tpu.memory_space<vmem>>, %arg4: memref<128x256xbf16, #tpu.memory_space<vmem>>, %arg5: memref<1x256xf32, #tpu.memory_space<vmem>>, %arg6: memref<256x32xbf16, #tpu.memory_space<vmem>>, %arg7: memref<1x32xf32, #tpu.memory_space<vmem>>, %arg8: memref<32x256xbf16, #tpu.memory_space<vmem>>, %arg9: memref<1x256xf32, #tpu.memory_space<vmem>>, %arg10: memref<256x128xbf16, #tpu.memory_space<vmem>>, %arg11: memref<1x128xf32, #tpu.memory_space<vmem>>, %arg12: memref<8x128xf32, #tpu.memory_space<vmem>>) attributes {dimension_semantics = [#tpu.dimension_semantics<parallel>], iteration_bounds = array<i64: 1>, scalar_prefetch = 0 : i64, scratch_operands = 0 : i64, tpu.core_type = #tpu.core_type<tc>, window_params = [{transform_indices = @transform_0, window_bounds = array<i64: 8, 128>}, {pipeline_mode = #tpu.pipeline_mode<synchronous>, transform_indices = @transform_1, window_bounds = array<i64: 128, 128>}, {pipeline_mode = #tpu.pipeline_mode<synchronous>, transform_indices = @transform_2, window_bounds = array<i64: 1, 128>}, {pipeline_mode = #tpu.pipeline_mode<synchronous>, transform_indices = @transform_3, window_bounds = array<i64: 128, 256>}, {pipeline_mode = #tpu.pipeline_mode<synchronous>, transform_indices = @transform_4, window_bounds = array<i64: 1, 256>}, {pipeline_mode = #tpu.pipeline_mode<synchronous>, transform_indices = @transform_5, window_bounds = array<i64: 256, 32>}, {pipeline_mode = #tpu.pipeline_mode<synchronous>, transform_indices = @transform_6, window_bounds = array<i64: 1, 32>}, {pipeline_mode = #tpu.pipeline_mode<synchronous>, transform_indices = @transform_7, window_bounds = array<i64: 32, 256>}, {pipeline_mode = #tpu.pipeline_mode<synchronous>, transform_indices = @transform_8, window_bounds = array<i64: 1, 256>}, {pipeline_mode = #tpu.pipeline_mode<synchronous>, transform_indices = @transform_9, window_bounds = array<i64: 256, 128>}, {pipeline_mode = #tpu.pipeline_mode<synchronous>, transform_indices = @transform_10, window_bounds = array<i64: 1, 128>}, {transform_indices = @transform_11, window_bounds = array<i64: 8, 128>}]} {
    %c0 = arith.constant 0 : index
    %c0_0 = arith.constant 0 : index
    %0 = vector.load %arg1[%c0, %c0_0] : memref<8x128xbf16, #tpu.memory_space<vmem>>, vector<8x128xbf16>
    %c0_1 = arith.constant 0 : index
    %c0_2 = arith.constant 0 : index
    %1 = vector.load %arg2[%c0_1, %c0_2] : memref<128x128xbf16, #tpu.memory_space<vmem>>, vector<128x128xbf16>
    %cst = arith.constant dense<0.000000e+00> : vector<8x128xf32>
    %2 = tpu.matmul %0, %1, %cst {dimension_numbers = #tpu.dot_dimension_numbers<[1], [0], [0], [1], [0, 0, 1, 1], [], []>} : vector<8x128xbf16>, vector<128x128xbf16>, vector<8x128xf32> -> vector<8x128xf32>
    %c0_3 = arith.constant 0 : index
    %c0_4 = arith.constant 0 : index
    %3 = vector.load %arg3[%c0_3, %c0_4] : memref<1x128xf32, #tpu.memory_space<vmem>>, vector<1x128xf32>
    %4 = vector.broadcast %3 : vector<1x128xf32> to vector<8x128xf32>
    %5 = arith.addf %2, %4 : vector<8x128xf32>
    %cst_5 = arith.constant 0.000000e+00 : f32
    %6 = vector.broadcast %cst_5 : f32 to vector<8x128xf32>
    %7 = arith.maximumf %5, %6 : vector<8x128xf32>
    %8 = arith.truncf %7 : vector<8x128xf32> to vector<8x128xbf16>
    %c0_6 = arith.constant 0 : index
    %c0_7 = arith.constant 0 : index
    %9 = vector.load %arg4[%c0_6, %c0_7] : memref<128x256xbf16, #tpu.memory_space<vmem>>, vector<128x256xbf16>
    %cst_8 = arith.constant dense<0.000000e+00> : vector<8x256xf32>
    %10 = tpu.matmul %8, %9, %cst_8 {dimension_numbers = #tpu.dot_dimension_numbers<[1], [0], [0], [1], [0, 0, 1, 1], [], []>} : vector<8x128xbf16>, vector<128x256xbf16>, vector<8x256xf32> -> vector<8x256xf32>
    %c0_9 = arith.constant 0 : index
    %c0_10 = arith.constant 0 : index
    %11 = vector.load %arg5[%c0_9, %c0_10] : memref<1x256xf32, #tpu.memory_space<vmem>>, vector<1x256xf32>
    %12 = vector.broadcast %11 : vector<1x256xf32> to vector<8x256xf32>
    %13 = arith.addf %10, %12 : vector<8x256xf32>
    %cst_11 = arith.constant 0.000000e+00 : f32
    %14 = vector.broadcast %cst_11 : f32 to vector<8x256xf32>
    %15 = arith.maximumf %13, %14 : vector<8x256xf32>
    %16 = arith.truncf %15 : vector<8x256xf32> to vector<8x256xbf16>
    %c0_12 = arith.constant 0 : index
    %c0_13 = arith.constant 0 : index
    %17 = vector.load %arg6[%c0_12, %c0_13] : memref<256x32xbf16, #tpu.memory_space<vmem>>, vector<256x32xbf16>
    %cst_14 = arith.constant dense<0.000000e+00> : vector<8x32xf32>
    %18 = tpu.matmul %16, %17, %cst_14 {dimension_numbers = #tpu.dot_dimension_numbers<[1], [0], [0], [1], [0, 0, 1, 1], [], []>} : vector<8x256xbf16>, vector<256x32xbf16>, vector<8x32xf32> -> vector<8x32xf32>
    %c0_15 = arith.constant 0 : index
    %c0_16 = arith.constant 0 : index
    %19 = vector.load %arg7[%c0_15, %c0_16] : memref<1x32xf32, #tpu.memory_space<vmem>>, vector<1x32xf32>
    %20 = vector.broadcast %19 : vector<1x32xf32> to vector<8x32xf32>
    %21 = arith.addf %18, %20 : vector<8x32xf32>
    %cst_17 = arith.constant 0.000000e+00 : f32
    %22 = vector.broadcast %cst_17 : f32 to vector<8x32xf32>
    %23 = arith.maximumf %21, %22 : vector<8x32xf32>
    %24 = arith.truncf %23 : vector<8x32xf32> to vector<8x32xbf16>
    %c0_18 = arith.constant 0 : index
    %c0_19 = arith.constant 0 : index
    %25 = vector.load %arg8[%c0_18, %c0_19] : memref<32x256xbf16, #tpu.memory_space<vmem>>, vector<32x256xbf16>
    %cst_20 = arith.constant dense<0.000000e+00> : vector<8x256xf32>
    %26 = tpu.matmul %24, %25, %cst_20 {dimension_numbers = #tpu.dot_dimension_numbers<[1], [0], [0], [1], [0, 0, 1, 1], [], []>} : vector<8x32xbf16>, vector<32x256xbf16>, vector<8x256xf32> -> vector<8x256xf32>
    %c0_21 = arith.constant 0 : index
    %c0_22 = arith.constant 0 : index
    %27 = vector.load %arg9[%c0_21, %c0_22] : memref<1x256xf32, #tpu.memory_space<vmem>>, vector<1x256xf32>
    %28 = vector.broadcast %27 : vector<1x256xf32> to vector<8x256xf32>
    %29 = arith.addf %26, %28 : vector<8x256xf32>
    %cst_23 = arith.constant 0.000000e+00 : f32
    %30 = vector.broadcast %cst_23 : f32 to vector<8x256xf32>
    %31 = arith.maximumf %29, %30 : vector<8x256xf32>
    %32 = arith.truncf %31 : vector<8x256xf32> to vector<8x256xbf16>
    %c0_24 = arith.constant 0 : index
    %c0_25 = arith.constant 0 : index
    %33 = vector.load %arg10[%c0_24, %c0_25] : memref<256x128xbf16, #tpu.memory_space<vmem>>, vector<256x128xbf16>
    %cst_26 = arith.constant dense<0.000000e+00> : vector<8x128xf32>
    %34 = tpu.matmul %32, %33, %cst_26 {dimension_numbers = #tpu.dot_dimension_numbers<[1], [0], [0], [1], [0, 0, 1, 1], [], []>} : vector<8x256xbf16>, vector<256x128xbf16>, vector<8x128xf32> -> vector<8x128xf32>
    %c0_27 = arith.constant 0 : index
    %c0_28 = arith.constant 0 : index
    %35 = vector.load %arg11[%c0_27, %c0_28] : memref<1x128xf32, #tpu.memory_space<vmem>>, vector<1x128xf32>
    %36 = vector.broadcast %35 : vector<1x128xf32> to vector<8x128xf32>
    %37 = arith.addf %34, %36 : vector<8x128xf32>
    %c0_29 = arith.constant 0 : index
    %c0_30 = arith.constant 0 : index
    %38 = vector.load %arg12[%c0_29, %c0_30] : memref<8x128xf32, #tpu.memory_space<vmem>>, vector<8x128xf32>
    tpu.vector_store %arg12[%c0_29, %c0_30], %37 {strides = array<i32>} : memref<8x128xf32, #tpu.memory_space<vmem>>, vector<8x128xf32>,
    return
  }
  func.func @transform_0(%arg0: i32) -> (i32, i32) {
    %c0_i32 = arith.constant 0 : i32
    %c0_i32_0 = arith.constant 0 : i32
    return %arg0, %c0_i32 : i32, i32
  }
  func.func @transform_1(%arg0: i32) -> (i32, i32) {
    %c0_i32 = arith.constant 0 : i32
    %c0_i32_0 = arith.constant 0 : i32
    %c0_i32_1 = arith.constant 0 : i32
    return %c0_i32, %c0_i32_0 : i32, i32
  }
  func.func @transform_2(%arg0: i32) -> (i32, i32) {
    %c0_i32 = arith.constant 0 : i32
    %c0_i32_0 = arith.constant 0 : i32
    %c0_i32_1 = arith.constant 0 : i32
    return %c0_i32, %c0_i32_0 : i32, i32
  }
  func.func @transform_3(%arg0: i32) -> (i32, i32) {
    %c0_i32 = arith.constant 0 : i32
    %c0_i32_0 = arith.constant 0 : i32
    %c0_i32_1 = arith.constant 0 : i32
    return %c0_i32, %c0_i32_0 : i32, i32
  }
  func.func @transform_4(%arg0: i32) -> (i32, i32) {
    %c0_i32 = arith.constant 0 : i32
    %c0_i32_0 = arith.constant 0 : i32
    %c0_i32_1 = arith.constant 0 : i32
    return %c0_i32, %c0_i32_0 : i32, i32
  }
  func.func @transform_5(%arg0: i32) -> (i32, i32) {
    %c0_i32 = arith.constant 0 : i32
    %c0_i32_0 = arith.constant 0 : i32
    %c0_i32_1 = arith.constant 0 : i32
    return %c0_i32, %c0_i32_0 : i32, i32
  }
  func.func @transform_6(%arg0: i32) -> (i32, i32) {
    %c0_i32 = arith.constant 0 : i32
    %c0_i32_0 = arith.constant 0 : i32
    %c0_i32_1 = arith.constant 0 : i32
    return %c0_i32, %c0_i32_0 : i32, i32
  }
  func.func @transform_7(%arg0: i32) -> (i32, i32) {
    %c0_i32 = arith.constant 0 : i32
    %c0_i32_0 = arith.constant 0 : i32
    %c0_i32_1 = arith.constant 0 : i32
    return %c0_i32, %c0_i32_0 : i32, i32
  }
  func.func @transform_8(%arg0: i32) -> (i32, i32) {
    %c0_i32 = arith.constant 0 : i32
    %c0_i32_0 = arith.constant 0 : i32
    %c0_i32_1 = arith.constant 0 : i32
    return %c0_i32, %c0_i32_0 : i32, i32
  }
  func.func @transform_9(%arg0: i32) -> (i32, i32) {
    %c0_i32 = arith.constant 0 : i32
    %c0_i32_0 = arith.constant 0 : i32
    %c0_i32_1 = arith.constant 0 : i32
    return %c0_i32, %c0_i32_0 : i32, i32
  }
  func.func @transform_10(%arg0: i32) -> (i32, i32) {
    %c0_i32 = arith.constant 0 : i32
    %c0_i32_0 = arith.constant 0 : i32
    %c0_i32_1 = arith.constant 0 : i32
    return %c0_i32, %c0_i32_0 : i32, i32
  }
  func.func @transform_11(%arg0: i32) -> (i32, i32) {
    %c0_i32 = arith.constant 0 : i32
    %c0_i32_0 = arith.constant 0 : i32
    return %arg0, %c0_i32 : i32, i32
  }
}

</mosaic_0001>

<bundles_post_ra>
// kernel: tpu_custom_call.1
= control target key start
LH: loop header
LB: loop body
LE: loop exit
PB: predicated region body
PF: predicated region fallthrough
CT: control target
= control target key end

     0   :  { %16 = vsyncpa [#allocation3], 0  ;;  %s1419_s0 = inlined_call_operand.hbm [shape: bf16[8,128], index: 0, kind: input, shape index: {}]   ;;  %s1420_s1 = inlined_call_operand.hbm [shape: bf16[128,128], index: 1, kind: input, shape index: {}]   ;;  %s1421_s2 = inlined_call_operand.hbm [shape: f32[1,128], index: 2, kind: input, shape index: {}]   ;;  %s1422_s3 = inlined_call_operand.vmem [shape: bf16[128,256], index: 3, kind: input, shape index: {}]   ;;  %s1423_s4 = inlined_call_operand.vmem [shape: f32[1,256], index: 4, kind: input, shape index: {}]   ;;  %s1424_s5 = inlined_call_operand.vmem [shape: bf16[256,32], index: 5, kind: input, shape index: {}]   ;;  %s1425_s6 = inlined_call_operand.vmem [shape: f32[1,32], index: 6, kind: input, shape index: {}]   ;;  %s1426_s7 = inlined_call_operand.vmem [shape: bf16[32,256], index: 7, kind: input, shape index: {}]   ;;  %s1427_s8 = inlined_call_operand.vmem [shape: f32[1,256], index: 8, kind: input, shape index: {}]   ;;  %s1428_s9 = inlined_call_operand.hbm [shape: bf16[256,128], index: 9, kind: input, shape index: {}]   ;;  %s1429_s10 = inlined_call_operand.vmem [shape: f32[1,128], index: 10, kind: input, shape index: {}]   ;;  %s1430_s11 = inlined_call_operand.hbm [shape: f32[8,128], index: 11, kind: output, shape index: {}]  }
   0x1   :  { %17 = vsyncpa [#allocation6], 0 }
   0x2   :  { %18 = vsyncpa [#allocation9], 0  ;;  %s35_s19 = sshll.u32 %s1420_s1, 4  ;;  %s36_s19 = int_to_ptr.hbm [resolvable:$true] %s35_s19 }
   0x3   :  { %19 = vsyncpa [#allocation4], 0  ;;  %s1157_s20 = smov [#allocation5]   ;;  %s25_s24 = sshll.u32 %s1419_s0, 4  ;;  %s26_s24 = int_to_ptr.hbm [resolvable:$true] %s25_s24 }
   0x4   :  { %s37_s21 = sshll.u32 %s1157_s20, 4  ;;  %s1158_s25 = smov 64   ;;  %s38_s21 = int_to_ptr.vmem [resolvable:$true] %s37_s21 }
   0x5   :  { %s1159_s26 = smov 4   ;;  %s1160_s27 = smov [#allocation2]  }
   0x6   :  { %43 = dma.hbm_to_vmem [thread:$0]  %s36_s19, 1024, %s38_s21, [#allocation6], %s1158_s25, %s1158_s25, %s1159_s26  }
   0x7   :  { %s27_s28 = sshll.u32 %s1160_s27, 4  ;;  %s49_s12 = sshll.u32 %s1421_s2, 4  ;;  %s28_s28 = int_to_ptr.vmem [resolvable:$true] %s27_s28  ;;  %s50_s12 = int_to_ptr.hbm [resolvable:$true] %s49_s12 }
   0x8   :  { %30 = dma.hbm_to_vmem [thread:$0]  %s26_s24, 64, %s28_s28, [#allocation3]  }
   0x9   :  { %s71_s14 = sshll.u32 %s1428_s9, 4  ;;  %s1161_s15 = smov [#allocation7]   ;;  %s72_s14 = int_to_ptr.hbm [resolvable:$true] %s71_s14 }
   0xa   :  { %s51_s16 = sshll.u32 %s1161_s15, 4  ;;  %s1162_s0 = smov [#allocation8]   ;;  %s52_s16 = int_to_ptr.vmem [resolvable:$true] %s51_s16 }
   0xb   :  { %54 = dma.hbm_to_vmem [thread:$0]  %s50_s12, 16, %s52_s16, [#allocation6]  }
   0xc   :  { %s73_s17 = sshll.u32 %s1162_s0, 4  ;;  %s74_s17 = int_to_ptr.vmem [resolvable:$true] %s73_s17 }
   0xd   :  { %79 = dma.hbm_to_vmem [thread:$0]  %s72_s14, 2048, %s74_s17, [#allocation9], %s1158_s25, %s1158_s25, %s1159_s26  }
   0xe   :  { %1149 = dma.done.wait [#allocation3], 64  }
   0xf   :  { %1150 = vsyncadd [#allocation3], 4294967232 }
  0x10   :  { %1151 = dma.done.wait [#allocation6], 1040  }
  0x11   :  { %1152 = vsyncadd [#allocation6], 4294966256 }
  0x12   :  { %1153 = dma.done.wait [#allocation9], 2048  }
  0x13   :  { %1154 = vsyncadd [#allocation9], 4294965248  ;;  %v966_v0 = vld [vmem:[#allocation5 + $0x38] sm:$0xff]  ;;  %v965_v1 = vld [vmem:[#allocation5 + $0x30] sm:$0xff]  ;;  %vm505_vm0 = vcmask 261120   ;;  %s705_s18 = sshll.u32 %s1430_s11, 4  ;;  %s706_s18 = int_to_ptr.hbm [resolvable:$true] %s705_s18 }
  0x14   :  { %168 = vmatpush.bf16.msra.mxu0 %v966_v0  ;;  %v807_v2 = vld [vmem:[%s1422_s3 + $0x70] sm:$0xf]  ;;  %v982_v3 = vld [vmem:[%s1422_s3 + $0x74] sm:$0xf0]  ;;  %v981_v4 = vld [vmem:[%s1422_s3 + $0x74] sm:$0xf] }
  0x15   :  { %v808_v5 = vor.u32 %v982_v3, %v807_v2  ;;  %v809_v6 = vld [vmem:[%s1422_s3 + $0x78] sm:$0xf0]  ;;  %v799_v7 = vld [vmem:[%s1422_s3 + $0x60] sm:$0xf]  ;;  %v980_v8 = vld [vmem:[%s1422_s3 + $0x64] sm:$0xf0] }
  0x16   :  { %v812_v9 = vor.u32 %v981_v4, %v809_v6  ;;  %v979_v10 = vld [vmem:[%s1422_s3 + $0x64] sm:$0xf]  ;;  %v801_v11 = vld [vmem:[%s1422_s3 + $0x68] sm:$0xf0]  ;;  %v800_v13 = vor.u32 %v980_v8, %v799_v7  ;;  %v791_v15 = vld [vmem:[%s1422_s3 + $0x50] sm:$0xf] }
  0x17   :  { %v964_v12 = vld [vmem:[#allocation5 + $0x28] sm:$0xff]  ;;  %285 = vmatpush.bf16.msra.mxu1 %v808_v5  ;;  %v804_v14 = vor.u32 %v979_v10, %v801_v11  ;;  %v978_v16 = vld [vmem:[%s1422_s3 + $0x54] sm:$0xf0]  ;;  %v977_v17 = vld [vmem:[%s1422_s3 + $0x54] sm:$0xf] }
  0x18   :  { %169 = vmatpush.bf16.msra.mxu0 %v965_v1  ;;  %298 = vmatpush.bf16.msra.mxu2 %v812_v9  ;;  %v793_v18 = vld [vmem:[%s1422_s3 + $0x58] sm:$0xf0]  ;;  %v963_v19 = vld [vmem:[#allocation5 + $0x20] sm:$0xff]  ;;  %v792_v20 = vor.u32 %v978_v16, %v791_v15  ;;  %v783_v21 = vld [vmem:[%s1422_s3 + $0x40] sm:$0xf] }
  0x19   :  { %v796_v22 = vor.u32 %v977_v17, %v793_v18  ;;  %v976_v23 = vld [vmem:[%s1422_s3 + $0x44] sm:$0xf0]  ;;  %v975_v24 = vld [vmem:[%s1422_s3 + $0x44] sm:$0xf]  ;;  %v785_v25 = vld [vmem:[%s1422_s3 + $0x48] sm:$0xf0] }
  0x1a   :  { %v962_v26 = vld [vmem:[#allocation5 + $0x18] sm:$0xff]  ;;  %v784_v27 = vor.u32 %v976_v23, %v783_v21  ;;  %v788_v28 = vor.u32 %v975_v24, %v785_v25  ;;  %v775_v29 = vld [vmem:[%s1422_s3 + $0x30] sm:$0xf]  ;;  %v974_v30 = vld [vmem:[%s1422_s3 + $0x34] sm:$0xf0] }
  0x1b   :  { %286 = vmatpush.bf16.msra.mxu1 %v800_v13  ;;  %v973_v31 = vld [vmem:[%s1422_s3 + $0x34] sm:$0xf]  ;;  %v777_v32 = vld [vmem:[%s1422_s3 + $0x38] sm:$0xf0]  ;;  %v776_v34 = vor.u32 %v974_v30, %v775_v29  ;;  %v767_v36 = vld [vmem:[%s1422_s3 + $0x20] sm:$0xf] }
  0x1c   :  { %170 = vmatpush.bf16.msra.mxu0 %v964_v12  ;;  %299 = vmatpush.bf16.msra.mxu2 %v804_v14  ;;  %v961_v33 = vld [vmem:[#allocation5 + $0x10] sm:$0xff]  ;;  %v780_v35 = vor.u32 %v973_v31, %v777_v32  ;;  %v972_v37 = vld [vmem:[%s1422_s3 + $0x24] sm:$0xf0]  ;;  %v971_v38 = vld [vmem:[%s1422_s3 + $0x24] sm:$0xf] }
  0x1d   :  { %v769_v39 = vld [vmem:[%s1422_s3 + $0x28] sm:$0xf0]  ;;  %v768_v41 = vor.u32 %v972_v37, %v767_v36  ;;  %v959_v43 = vld [vmem:[#allocation5] sm:$0xff]  ;;  %v99_v44 = vld [vmem:[#allocation2] sm:$0xf] }
  0x1e   :  { %v960_v40 = vld [vmem:[#allocation5 + $0x8] sm:$0xff]  ;;  %v772_v42 = vor.u32 %v971_v38, %v769_v39  ;;  %v970_v46 = vld [vmem:[%s1422_s3 + $0x14] sm:$0xf0]  ;;  %v969_v47 = vld [vmem:[%s1422_s3 + $0x14] sm:$0xf] }
  0x1f   :  { %287 = vmatpush.bf16.msra.mxu1 %v792_v20  ;;  %v759_v45 = vld [vmem:[%s1422_s3 + $0x10] sm:$0xf]  ;;  %v761_v49 = vld [vmem:[%s1422_s3 + $0x18] sm:$0xf0]  ;;  %v751_v51 = vld [vmem:[%s1422_s3] sm:$0xf] }
  0x20   :  { %171 = vmatpush.bf16.msra.mxu0 %v963_v19  ;;  %300 = vmatpush.bf16.msra.mxu2 %v796_v22  ;;  %v760_v48 = vor.u32 %v970_v46, %v759_v45  ;;  %v764_v50 = vor.u32 %v969_v47, %v761_v49  ;;  %v968_v52 = vld [vmem:[%s1422_s3 + $0x4] sm:$0xf0]  ;;  %v967_v53 = vld [vmem:[%s1422_s3 + $0x4] sm:$0xf]  ;;  %v753_v55 = vld [vmem:[%s1422_s3 + $0x8] sm:$0xf0] }
  0x21   :  { %v752_v54 = vor.u32 %v968_v52, %v751_v51  ;;  %v756_v56 = vor.u32 %v967_v53, %v753_v55  ;;  %v990_v57 = vld [vmem:[%s1424_s5 + $0x38] sm:$0xff]  ;;  %v989_v59 = vld [vmem:[%s1424_s5 + $0x30] sm:$0xff]  ;;  %v988_v61 = vld [vmem:[%s1424_s5 + $0x28] sm:$0xff] }
  0x22   :  { %v998_v58 = vld [vmem:[%s1424_s5 + $0x78] sm:$0xff]  ;;  %447 = vmatpush.bf16.msra.mxu3 %v990_v57  ;;  %v997_v60 = vld [vmem:[%s1424_s5 + $0x70] sm:$0xff]  ;;  %v996_v62 = vld [vmem:[%s1424_s5 + $0x68] sm:$0xff] }
  0x23   :  { %288 = vmatpush.bf16.msra.mxu1 %v784_v27  ;;  %v987_v63 = vld [vmem:[%s1424_s5 + $0x20] sm:$0xff]  ;;  %v986_v1 = vld [vmem:[%s1424_s5 + $0x18] sm:$0xff]  ;;  %v985_v3 = vld [vmem:[%s1424_s5 + $0x10] sm:$0xff] }
  0x24   :  { %172 = vmatpush.bf16.msra.mxu0 %v962_v26  ;;  %301 = vmatpush.bf16.msra.mxu2 %v788_v28  ;;  %v995_v0 = vld [vmem:[%s1424_s5 + $0x60] sm:$0xff]  ;;  %v994_v2 = vld [vmem:[%s1424_s5 + $0x58] sm:$0xff]  ;;  %v984_v10 = vld [vmem:[%s1424_s5 + $0x8] sm:$0xff] }
  0x25   :  { %v1026_v4 = vld [vmem:[#allocation7] ss:$0 sm:$0xff]  ;;  %v993_v11 = vld [vmem:[%s1424_s5 + $0x50] sm:$0xff]  ;;  %v992_v13 = vld [vmem:[%s1424_s5 + $0x48] sm:$0xff] }
  0x26   :  { %448 = vmatpush.bf16.msra.mxu3 %v989_v59  ;;  %v983_v12 = vld [vmem:[%s1424_s5] sm:$0xff]  ;;  %v887_v15 = vld [vmem:[%s1426_s7 + $0x10] sm:$0xf]  ;;  %v1002_v16 = vld [vmem:[%s1426_s7 + $0x14] sm:$0xf0] }
  0x27   :  { %289 = vmatpush.bf16.msra.mxu1 %v776_v34  ;;  %v991_v14 = vld [vmem:[%s1424_s5 + $0x40] sm:$0xff]  ;;  %v888_v17 = vor.u32 %v1002_v16, %v887_v15  ;;  %v1000_v32 = vld [vmem:[%s1426_s7 + $0x4] sm:$0xf0]  ;;  %v1001_v34 = vld [vmem:[%s1426_s7 + $0x14] sm:$0xf] }
  0x28   :  { %173 = vmatpush.bf16.msra.mxu0 %v961_v33  ;;  %302 = vmatpush.bf16.msra.mxu2 %v780_v35  ;;  %v199_v18 = vld [vmem:[%s1423_s4] sm:$0x3]  ;;  %v889_v35 = vld [vmem:[%s1426_s7 + $0x18] sm:$0xf0]  ;;  %v999_v36 = vld [vmem:[%s1426_s7 + $0x4] sm:$0xf] }
  0x29   :  { %v201_v19 = vperm.slane %v199_v18, 0  ;;  %v202_v23 = vperm.slane %v199_v18, 1  ;;  %v879_v31 = vld [vmem:[%s1426_s7] sm:$0xf]  ;;  %v892_v37 = vor.u32 %v1001_v34, %v889_v35  ;;  %v881_v38 = vld [vmem:[%s1426_s7 + $0x8] sm:$0xf0] }
  0x2a   :  { %449 = vmatpush.bf16.msra.mxu3 %v988_v61  ;;  %v880_v33 = vor.u32 %v1000_v32, %v879_v31  ;;  %v884_v39 = vor.u32 %v999_v36, %v881_v38  ;;  %v1008_v45 = vld [vmem:[#allocation8 + $0x28] sm:$0xff]  ;;  %v1006_v53 = vld [vmem:[#allocation8 + $0x18] sm:$0xff]  ;;  %v1003_v59 = vld [vmem:[#allocation8] sm:$0xff] }
  0x2b   :  { %290 = vmatpush.bf16.msra.mxu1 %v768_v41  ;;  %v1018_v41 = vld [vmem:[#allocation8 + $0x78] sm:$0xff]  ;;  %v1004_v57 = vld [vmem:[#allocation8 + $0x8] sm:$0xff] }
  0x2c   :  { %174 = vmatpush.bf16.msra.mxu0 %v960_v40  ;;  %303 = vmatpush.bf16.msra.mxu2 %v772_v42  ;;  %v1010_v40 = vld [vmem:[#allocation8 + $0x38] sm:$0xff]  ;;  %v1009_v42 = vld [vmem:[#allocation8 + $0x30] sm:$0xff] }
  0x2d   :  { %v1014_v61 = vld [vmem:[#allocation8 + $0x58] sm:$0xff] }
  0x2e   :  { %450 = vmatpush.bf16.msra.mxu3 %v987_v63  ;;  %v1012_v63 = vld [vmem:[#allocation8 + $0x48] sm:$0xff]  ;;  %v1028_v15 = vld [vmem:[%s1429_s10] ss:$0 sm:$0xff] }
  0x2f   :  { %291 = vmatpush.bf16.msra.mxu1 %v760_v48 }
  0x30   :  { %175 = vmatpush.bf16.msra.mxu0 %v959_v43  ;;  %304 = vmatpush.bf16.msra.mxu2 %v764_v50  ;;  %v1017_v43 = vld [vmem:[#allocation8 + $0x70] sm:$0xff]  ;;  %v1007_v50 = vld [vmem:[#allocation8 + $0x20] sm:$0xff] }
  0x32   :  { %451 = vmatpush.bf16.msra.mxu3 %v986_v1  ;;  %v479_v1 = vld [vmem:[%s1427_s8] sm:$0x3]  ;;  %s1163_s8 = smov [#allocation10]  }
  0x33   :  { %176 = vmatmul.bf16.vlgmr.msra.gmra.mxu0 %v99_v44  ;;  %292 = vmatpush.bf16.msra.mxu1 %v752_v54  ;;  %v1027_v44 = vld [vmem:[%s1425_s6] ss:$0 sm:$0xff]  ;;  %s703_s17 = sshll.u32 %s1163_s8, 4  ;;  %s704_s17 = int_to_ptr.vmem [resolvable:$true] %s703_s17 }
  0x34   :  { %305 = vmatpush.bf16.msra.mxu2 %v756_v56  ;;  %460 = vmatpush.bf16.msrb.mxu0 %v998_v58  ;;  %v1005_v56 = vld [vmem:[#allocation8 + $0x10] sm:$0xff]  ;;  %v1016_v58 = vld [vmem:[#allocation8 + $0x68] sm:$0xff] }
  0x36   :  { %452 = vmatpush.bf16.msra.mxu3 %v985_v3 }
  0x37   :  { %684 = vmatpush.bf16.msrb.mxu1 %v1018_v41 }
  0x38   :  { %461 = vmatpush.bf16.msrb.mxu0 %v997_v60  ;;  %515 = vmatpush.bf16.msrb.mxu2 %v888_v17  ;;  %v1015_v60 = vld [vmem:[#allocation8 + $0x60] sm:$0xff] }
  0x3a   :  { %453 = vmatpush.bf16.msra.mxu3 %v984_v10 }
  0x3b   :  { %685 = vmatpush.bf16.msrb.mxu1 %v1017_v43 }
  0x3c   :  { %462 = vmatpush.bf16.msrb.mxu0 %v996_v62  ;;  %516 = vmatpush.bf16.msrb.mxu2 %v880_v33  ;;  %v1013_v62 = vld [vmem:[#allocation8 + $0x50] sm:$0xff] }
  0x3e   :  { %454 = vmatpush.bf16.msra.mxu3 %v983_v12 }
  0x3f   :  { %686 = vmatpush.bf16.msrb.mxu1 %v1016_v58 }
  0x40   :  { %463 = vmatpush.bf16.msrb.mxu0 %v995_v0  ;;  %v1011_v0 = vld [vmem:[#allocation8 + $0x40] sm:$0xff] }
  0x42   :  { %671 = vmatpush.bf16.msrb.mxu3 %v1010_v40 }
  0x43   :  { %687 = vmatpush.bf16.msrb.mxu1 %v1015_v60 }
  0x44   :  { %464 = vmatpush.bf16.msrb.mxu0 %v994_v2  ;;  %v481_v2 = vperm.slane %v479_v1, 0 }
  0x46   :  { %672 = vmatpush.bf16.msrb.mxu3 %v1009_v42 }
  0x47   :  { %688 = vmatpush.bf16.msrb.mxu1 %v1014_v61 }
  0x48   :  { %465 = vmatpush.bf16.msrb.mxu0 %v993_v11 }
  0x4a   :  { %673 = vmatpush.bf16.msrb.mxu3 %v1008_v45 }
  0x4b   :  { %689 = vmatpush.bf16.msrb.mxu1 %v1013_v62 }
  0x4c   :  { %466 = vmatpush.bf16.msrb.mxu0 %v992_v13 }
  0x4e   :  { %674 = vmatpush.bf16.msrb.mxu3 %v1007_v50 }
  0x4f   :  { %690 = vmatpush.bf16.msrb.mxu1 %v1012_v63 }
  0x50   :  { %467 = vmatpush.bf16.msrb.mxu0 %v991_v14 }
  0x52   :  { %675 = vmatpush.bf16.msrb.mxu3 %v1006_v53 }
  0x53   :  { %691 = vmatpush.bf16.msrb.mxu1 %v1011_v0 }
  0x56   :  { %676 = vmatpush.bf16.msrb.mxu3 %v1005_v56 }
  0x5a   :  { %677 = vmatpush.bf16.msrb.mxu3 %v1004_v57 }
  0x5e   :  { %678 = vmatpush.bf16.msrb.mxu3 %v1003_v59 }
  0xb0   :  { %v177_v5 = vpop.f32.mrf.mxu0 }
  0xb1   :  { %v178_v6 = vadd.f32 %v1026_v4, %v177_v5 }
  0xb3   :  { %v181_v7 = vmax.f32 %v178_v6, 0.0 }
  0xb5   :  { %v182_v8 = vpack.c.bf16 %v181_v7, %v181_v7 }
  0xb7   :  { %293 = vmatmul.bf16.vlgmr.msra.gmra.mxu1 %v182_v8  ;;  %306 = vmatmul.bf16.vlgmr.msra.gmra.mxu2 %v182_v8  ;;  %v482_v8 = vperm.slane %v479_v1, 1 }
  0xb8   :  { %v179_v9 = vpop.f32.mrf.mxu0  ;;  %528 = vmatpush.bf16.msra.mxu2 %v892_v37 }
  0xbc   :  { %529 = vmatpush.bf16.msra.mxu2 %v884_v39 }
 0x134   :  { %v294_v20 = vpop.f32.mrf.mxu1 }
 0x135   :  { %v295_v21 = vadd.f32 %v294_v20, %v201_v19 }
 0x137   :  { %v311_v22 = vmax.f32 %v295_v21, 0.0 }
 0x139   :  { %v313_v24 = vpack.c.bf16 %v311_v22, %v311_v22 }
 0x13a   :  { %v307_v25 = vpop.f32.mrf.mxu2 }
 0x13b   :  { %v308_v26 = vadd.f32 %v307_v25, %v202_v23  ;;  %455 = vmatmul.bf16.vlgmr.msra.gmra.mxu3 %v313_v24 }
 0x13c   :  { %v296_v27 = vpop.f32.mrf.mxu1 }
 0x13d   :  { %v312_v28 = vmax.f32 %v308_v26, 0.0 }
 0x13f   :  { %v314_v29 = vpack.c.bf16 %v312_v28, %v312_v28 }
 0x141   :  { %468 = vmatmul.bf16.vlgmr.msrb.gmra.mxu0 %v314_v29 }
 0x142   :  { %v309_v30 = vpop.f32.mrf.mxu2 }
 0x1be   :  { %v456_v46 = vpop.f32.mrf.mxu3  ;;  %v469_v47 = vpop.f32.mrf.mxu0 }
 0x1bf   :  { %v457_v48 = vadd.f32 %v1027_v44, %v456_v46 }
 0x1c1   :  { %v470_v49 = vadd.f32 %v469_v47, %v457_v48 }
 0x1c3   :  { %v473_v51 = vmax.f32 %v470_v49, 0.0 }
 0x1c5   :  { %v474_v52 = vpack.c.bf16 %v473_v51, %v473_v51 }
 0x1c6   :  { %v458_v54 = vpop.f32.mrf.mxu3  ;;  %v471_v55 = vpop.f32.mrf.mxu0 }
 0x1c7   :  { %893 = vmatmul.msk.bf16.vlgmr.msrb.gmra.mxu2 %vm505_vm0, %v474_v52 }
 0x1d7   :  { %894 = vmatmul.msk.bf16.vlgmr.msra.gmra.mxu2 %vm505_vm0, %v474_v52 }
 0x24a   :  { %v518_v3 = vpop.f32.mrf.mxu2 }
 0x24b   :  { %v519_v4 = vadd.f32 %v518_v3, %v481_v2 }
 0x24d   :  { %v535_v5 = vmax.f32 %v519_v4, 0.0 }
 0x24f   :  { %v537_v6 = vpack.c.bf16 %v535_v5, %v535_v5 }
 0x251   :  { %679 = vmatmul.bf16.vlgmr.msrb.gmra.mxu3 %v537_v6 }
 0x252   :  { %v520_v7 = vpop.f32.mrf.mxu2 }
 0x25a   :  { %v531_v9 = vpop.f32.mrf.mxu2 }
 0x25b   :  { %v532_v10 = vadd.f32 %v531_v9, %v482_v8 }
 0x25d   :  { %v536_v11 = vmax.f32 %v532_v10, 0.0 }
 0x25f   :  { %v538_v12 = vpack.c.bf16 %v536_v11, %v536_v11 }
 0x261   :  { %692 = vmatmul.bf16.vlgmr.msrb.gmra.mxu1 %v538_v12 }
 0x262   :  { %v533_v13 = vpop.f32.mrf.mxu2 }
 0x2d4   :  { %v680_v14 = vpop.f32.mrf.mxu3 }
 0x2d5   :  { %v681_v17 = vadd.f32 %v1028_v15, %v680_v14 }
 0x2dc   :  { %v682_v16 = vpop.f32.mrf.mxu3 }
 0x2de   :  { %v693_v18 = vpop.f32.mrf.mxu1 }
 0x2df   :  { %v694_v19 = vadd.f32 %v693_v18, %v681_v17 }
 0x2e1   :  { %697 = vst [vmem:[#allocation10] sm:$0xff] %v694_v19 }
 0x2e2   :  { %708 = dma.vmem_to_hbm [thread:$0]  %s704_s17, 128, %s706_s18, [#allocation4]  }
 0x2e6   :  { %v695_v20 = vpop.f32.mrf.mxu1 }
 0x2e7   :  { %1155 = dma.done.wait [#allocation4], 128  }
 0x2e8   :  { %1156 = vsyncadd [#allocation4], 4294967168 }
 0x2e9   :  { %713 = vsyncpa [#allocation3], 1 }
 0x2ea   :  { %714 = vsyncpa [#allocation6], 1 }
 0x2eb   :  { %715 = vsyncpa [#allocation9], 1 }
 0x2ec   :  { %716 = vsyncpa [#allocation4], 1 }

</bundles_post_ra>
